<compile_context>
chip_gen: v6e
topology: v6e:2x2x1
jax: 0.10.0
libtpu: 0.0.40
codegen_flags: <defaults>
</compile_context>

<pallas_src>
import math

import jax
import jax.numpy as jnp
from jax.experimental import pallas as pl
from jax.experimental.pallas import tpu as pltpu


# ----------------------------------------------------------------------------
# Kernels
# ----------------------------------------------------------------------------
def _fwd_kernel(x_ref, w_ref, bias_ref, o_ref):
    """One (tm, tn) output tile; full d_in contraction resident in VMEM."""
    a = x_ref[...]
    w = w_ref[...]
    if a.dtype != w.dtype:
        # In-kernel cast: x streams from HBM in its storage dtype and is cast in
        # VMEM, avoiding an extra host-side read+write pass over x.
        a = a.astype(w.dtype)
    acc = jnp.dot(a, w, preferred_element_type=jnp.float32)
    o_ref[...] = jnp.maximum(acc + bias_ref[...], 0.0).astype(o_ref.dtype)


def _fwd_kernel_ktiled(x_ref, w_ref, bias_ref, o_ref, acc_ref):
    """K-tiled variant: f32 accumulator, bias + ReLU epilogue on the last k."""
    k = pl.program_id(2)

    @pl.when(k == 0)
    def _():
        acc_ref[...] = jnp.zeros_like(acc_ref)

    a = x_ref[...]
    w = w_ref[...]
    if a.dtype != w.dtype:
        a = a.astype(w.dtype)
    acc_ref[...] += jnp.dot(a, w, preferred_element_type=jnp.float32)

    @pl.when(k == pl.num_programs(2) - 1)
    def _():
        o_ref[...] = jnp.maximum(acc_ref[...] + bias_ref[...], 0.0).astype(o_ref.dtype)


# ----------------------------------------------------------------------------
# Host-side helpers
# ----------------------------------------------------------------------------
def _vmem_capacity_bytes():
    try:
        return int(pltpu.get_tpu_info().vmem_capacity_bytes)
    except Exception:
        return 64 << 20  # conservative fallback: v7x per-TensorCore capacity


def _rd(v, a):
    """Round down to a multiple of `a` (never below `a`)."""
    return max((v // a) * a, a)


def prepare_cache_layer_params(W, bias=None, b_pre=None, *, compute_dtype=None):
    """One-time parameter prep — call once per parameter set, NOT per forward.

      * folds the pre-bias into the output bias:
            (x + b_pre) @ W + bias == x @ W + (b_pre @ W + bias)
      * optionally casts W to `compute_dtype` (e.g. jnp.bfloat16) so the kernel
        streams the dominant W tensor at half width (recommended on v5e, where
        HBM bandwidth is the lowest and the f32 MXU path is the slowest).

    Returns (W_kernel, bias_eff) ready for cache_layer_forward.
    """
    W = jnp.asarray(W)
    d_in, d_out = W.shape
    if bias is None:
        bias_f = jnp.zeros((d_out,), jnp.float32)
    else:
        bias_f = jnp.asarray(bias, jnp.float32).reshape(d_out)
    if b_pre is None:
        bias_eff = bias_f.reshape(1, d_out)
    else:
        b_pre_f = jnp.asarray(b_pre, jnp.float32).reshape(1, d_in)
        bias_eff = bias_f.reshape(1, d_out) + jnp.dot(b_pre_f, W.astype(jnp.float32))
    if compute_dtype is not None:
        W = W.astype(compute_dtype)
    return W, bias_eff


def cache_layer_forward(x, W, bias_eff, *, out_dtype=None, tm=None, tn=None, tk=None):
    """acts = ReLU(x @ W + bias_eff)  ==  ReLU((x + b_pre) @ W + bias).

    `W` / `bias_eff` come from prepare_cache_layer_params (weight cast and
    b_pre fold are one-time prep, not per-forward work).
    """
    B, d_in = x.shape
    d_in_w, d_out = W.shape
    assert d_in == d_in_w, (x.shape, W.shape)
    bias_eff = bias_eff.reshape(1, d_out).astype(jnp.float32)
    if out_dtype is None:
        out_dtype = x.dtype  # pass jnp.bfloat16 to halve the output HBM stream

    x_sz = jnp.dtype(x.dtype).itemsize
    w_sz = jnp.dtype(W.dtype).itemsize
    o_sz = jnp.dtype(out_dtype).itemsize
    # Row-tile alignment follows the sublane packing of the narrowest row-tiled
    # dtype (8 rows/vreg for 4-byte, 16 for 2-byte).
    m_align = max(8, 32 // min(x_sz, o_sz))

    # Generation-aware VMEM budget (v5e/v6e: 128 MiB physical, v7x: 64 MiB/TC),
    # with headroom for compiler-internal scratch.
    cap = _vmem_capacity_bytes()
    budget = min(cap * 3 // 4, 96 << 20)

    # Preferred tiles: big batch tiles (tm controls how many times W is
    # re-streamed from HBM), lane-dense output tiles.
    if tm is None:
        tm = B if B <= 1024 else _rd(1024, m_align)
    if tn is None:
        tn = d_out if d_out <= 512 else _rd(512, 128)

    def ws_simple(tm_, tn_):
        # double-buffered x / W / bias / out tiles
        return 2 * (tm_ * d_in * x_sz + d_in * tn_ * w_sz + tn_ * 4 + tm_ * tn_ * o_sz)

    def ws_ktiled(tm_, tn_, tk_):
        return (2 * (tm_ * tk_ * x_sz + tk_ * tn_ * w_sz + tn_ * 4 + tm_ * tn_ * o_sz)
                + tm_ * tn_ * 4)  # + single-buffered f32 accumulator scratch

    # --- shrink loop for the full-d_in-resident path.  Priority: keep tm large
    # (total W traffic = W_bytes * ceil(B/tm)), shrink tn first (output stays
    # lane-dense at >= 128), never drop tm below 128.
    tm_s, tn_s = tm, tn
    while ws_simple(tm_s, tn_s) > budget:
        if tn_s > 128:
            tn_s = _rd(max(tn_s // 2, 128), 128)
        elif tm_s > 128:
            tm_s = _rd(max(tm_s // 2, 128), m_align)
        else:
            break

    use_ktiling = (tk is not None) or (ws_simple(tm_s, tn_s) > budget)
    flops = 2 * B * d_in * d_out

    if not use_ktiling:
        tm, tn = tm_s, tn_s
        n_i, n_j = pl.cdiv(B, tm), pl.cdiv(d_out, tn)

        # Adaptive residency: keep the operand whose re-streaming would cost
        # more HBM bytes resident across the inner grid axis.
        x_bytes = B * d_in * x_sz
        w_bytes = d_in * d_out * w_sz
        traffic_x_res = x_bytes + w_bytes * n_i   # grid (i, j): x resident over j
        traffic_w_res = w_bytes + x_bytes * n_j   # grid (j, i): W resident over i
        if traffic_x_res <= traffic_w_res:
            grid = (n_i, n_j)
            x_map = lambda i, j: (i, 0)
            w_map = lambda i, j: (0, j)
            b_map = lambda i, j: (0, j)
            o_map = lambda i, j: (i, j)
            read_bytes = traffic_x_res
        else:
            # d_out-major grid: each independent chunk of output columns reads
            # its own slice of W — on v7x the two TensorCores then split W
            # rather than both streaming all of it.
            grid = (n_j, n_i)
            x_map = lambda j, i: (i, 0)
            w_map = lambda j, i: (0, j)
            b_map = lambda j, i: (0, j)
            o_map = lambda j, i: (i, j)
            read_bytes = traffic_w_res

        ws = ws_simple(tm, tn)
        kernel = _fwd_kernel
        in_specs = [
            pl.BlockSpec((tm, d_in), x_map),
            pl.BlockSpec((d_in, tn), w_map),
            pl.BlockSpec((1, tn), b_map),
        ]
        out_spec = pl.BlockSpec((tm, tn), o_map)
        scratch_shapes = []
        dim_sem = ("parallel", "parallel")
        operands = (x, W, bias_eff)
    else:
        # --- K-tiled path: keep tm/tn large and tile the contraction instead of
        # collapsing the output tiles when d_in is too big to stay resident.
        tm_k, tn_k = tm, tn
        tk_ = tk if tk is not None else min(d_in, 2048)
        tk_ = min(tk_, d_in)
        if tk_ < d_in:
            tk_ = _rd(tk_, 128)
        while ws_ktiled(tm_k, tn_k, tk_) > budget:
            if tk_ > 512:
                tk_ = _rd(max(tk_ // 2, 512), 128)
            elif tn_k > 128:
                tn_k = _rd(max(tn_k // 2, 128), 128)
            elif tm_k > 128:
                tm_k = _rd(max(tm_k // 2, 128), m_align)
            elif tk_ > 128:
                tk_ = _rd(max(tk_ // 2, 128), 128)
            else:
                break
        tm, tn = tm_k, tn_k

        n_k = pl.cdiv(d_in, tk_)
        d_in_p = n_k * tk_
        if d_in_p != d_in:
            # Zero-pad the contraction dim so a partial final K block never
            # feeds garbage into the accumulator.
            # TODO(synk): fold the W padding into prepare_cache_layer_params so
            # it is not redone per call on this (rare, large-d_in) path.
            x = jnp.pad(x, ((0, 0), (0, d_in_p - d_in)))
            W = jnp.pad(W, ((0, d_in_p - d_in), (0, 0)))

        n_i, n_j = pl.cdiv(B, tm), pl.cdiv(d_out, tn)
        grid = (n_i, n_j, n_k)
        read_bytes = B * d_in_p * x_sz * n_j + d_in_p * d_out * w_sz * n_i

        ws = ws_ktiled(tm, tn, tk_)
        kernel = _fwd_kernel_ktiled
        in_specs = [
            pl.BlockSpec((tm, tk_), lambda i, j, k: (i, k)),
            pl.BlockSpec((tk_, tn), lambda i, j, k: (k, j)),
            pl.BlockSpec((1, tn), lambda i, j, k: (0, j)),
        ]
        out_spec = pl.BlockSpec((tm, tn), lambda i, j, k: (i, j))
        scratch_shapes = [pltpu.VMEM((tm, tn), jnp.float32)]
        dim_sem = ("parallel", "parallel", "arbitrary")
        operands = (x, W, bias_eff)

    cost = pl.CostEstimate(
        flops=flops,
        transcendentals=0,
        bytes_accessed=int(read_bytes + d_out * 4 + B * d_out * o_sz),
    )
    # Explicit scoped-VMEM limit: working set + headroom, capped at physical.
    vmem_limit = int(min(cap, ws + (4 << 20)))

    return pl.pallas_call(
        kernel,
        out_shape=jax.ShapeDtypeStruct((B, d_out), out_dtype),
        grid_spec=pltpu.PrefetchScalarGridSpec(
            num_scalar_prefetch=0,
            grid=grid,
            in_specs=in_specs,
            out_specs=out_spec,
            scratch_shapes=scratch_shapes,
        ),
        compiler_params=pltpu.CompilerParams(
            dimension_semantics=dim_sem,
            vmem_limit_bytes=vmem_limit,
        ),
        cost_estimate=cost,
    )(*operands)


def kaiming_uniform(key, shape, dtype=jnp.float32):
    # torch.nn.init.kaiming_uniform_ on a (d_in, d_out) tensor; only affects
    # init magnitude, not kernel math (deterministic init is all the test needs).
    fan_in = shape[-2]
    bound = math.sqrt(6.0 / fan_in)
    return jax.random.uniform(key, shape, dtype, minval=-bound, maxval=bound)


if __name__ == "__main__":
    key = jax.random.PRNGKey(0)
    ks = jax.random.split(key, 8)

    # --- Test 1: CacheLayer.from_dims(32, 64, bias=True, b_in=True) toy shapes.
    B, d_in, d_out = 8, 32, 64
    W = kaiming_uniform(ks[0], (d_in, d_out))
    bias = jnp.zeros((d_out,), jnp.float32)
    b_pre = jnp.zeros((d_in,), jnp.float32)
    x = jax.random.normal(ks[1], (B, d_in), jnp.float32)

    Wk, bias_eff = prepare_cache_layer_params(W, bias, b_pre)
    acts = jax.block_until_ready(cache_layer_forward(x, Wk, bias_eff))
    ref = jnp.maximum((x + b_pre) @ W + bias, 0.0)
    assert acts.shape == (B, d_out)
    assert jnp.allclose(acts, ref, atol=1e-5, rtol=1e-5)

    # --- Test 2: tiled path (grid > 1) with nonzero b_pre / bias, f32.
    B2, d_in2, d_out2 = 1024, 64, 1024
    W2 = kaiming_uniform(ks[2], (d_in2, d_out2))
    bias2 = 0.5 * jax.random.normal(ks[3], (d_out2,), jnp.float32)
    b_pre2 = jax.random.normal(ks[4], (d_in2,), jnp.float32)
    x2 = jax.random.normal(ks[5], (B2, d_in2), jnp.float32)
    ref2 = jnp.maximum((x2 + b_pre2) @ W2 + bias2, 0.0)

    W2k, bias2_eff = prepare_cache_layer_params(W2, bias2, b_pre2)
    acts2 = jax.block_until_ready(cache_layer_forward(x2, W2k, bias2_eff))
    assert acts2.shape == (B2, d_out2)
    assert jnp.allclose(acts2, ref2, atol=1e-4, rtol=1e-4)

    # --- Test 3: bf16 weight stream (one-time cast in prep), f32 accumulation.
    W2b, bias2b_eff = prepare_cache_layer_params(
        W2, bias2, b_pre2, compute_dtype=jnp.bfloat16)
    acts3 = jax.block_until_ready(cache_layer_forward(x2, W2b, bias2b_eff))
    assert jnp.allclose(acts3, ref2, atol=5e-2, rtol=5e-2)

    # --- Test 4: forced K-tiled accumulator path (tk < d_in).
    B4, d_in4, d_out4 = 256, 384, 512
    W4 = kaiming_uniform(ks[6], (d_in4, d_out4))
    b_pre4 = 0.1 * jax.random.normal(ks[7], (d_in4,), jnp.float32)
    bias4 = jnp.zeros((d_out4,), jnp.float32)
    x4 = jax.random.normal(ks[1], (B4, d_in4), jnp.float32)
    W4k, bias4_eff = prepare_cache_layer_params(W4, bias4, b_pre4)
    acts4 = jax.block_until_ready(cache_layer_forward(x4, W4k, bias4_eff, tk=128))
    ref4 = jnp.maximum((x4 + b_pre4) @ W4 + bias4, 0.0)
    assert jnp.allclose(acts4, ref4, atol=1e-4, rtol=1e-4)

    # --- Test 5: W-resident grid orientation (forced small tm flips residency).
    B5, d_in5, d_out5 = 512, 64, 128
    W5 = kaiming_uniform(ks[2], (d_in5, d_out5))
    x5 = jax.random.normal(ks[3], (B5, d_in5), jnp.float32)
    W5k, bias5_eff = prepare_cache_layer_params(W5)
    acts5 = jax.block_until_ready(cache_layer_forward(x5, W5k, bias5_eff, tm=128))
    ref5 = jnp.maximum(x5 @ W5, 0.0)
    assert jnp.allclose(acts5, ref5, atol=1e-4, rtol=1e-4)

    print("KERNEL_OK")
</pallas_src>

<mosaic_0001>
module attributes {stable_mosaic.version = 11 : i64} {
  func.func @_fwd_kernel(%arg0: i32, %arg1: i32, %arg2: memref<8x32xf32, #tpu.memory_space<vmem>>, %arg3: memref<32x64xf32, #tpu.memory_space<vmem>>, %arg4: memref<1x64xf32, #tpu.memory_space<vmem>>, %arg5: memref<8x64xf32, #tpu.memory_space<vmem>>) attributes {dimension_semantics = [#tpu.dimension_semantics<parallel>, #tpu.dimension_semantics<parallel>], iteration_bounds = array<i64: 1, 1>, scalar_prefetch = 0 : i64, scratch_operands = 0 : i64, tpu.core_type = #tpu.core_type<tc>, window_params = [{transform_indices = @transform_0, window_bounds = array<i64: 8, 32>}, {transform_indices = @transform_1, window_bounds = array<i64: 32, 64>}, {transform_indices = @transform_2, window_bounds = array<i64: 1, 64>}, {transform_indices = @transform_3, window_bounds = array<i64: 8, 64>}]} {
    %c0 = arith.constant 0 : index
    %c0_0 = arith.constant 0 : index
    %0 = vector.load %arg2[%c0, %c0_0] : memref<8x32xf32, #tpu.memory_space<vmem>>, vector<8x32xf32>
    %c0_1 = arith.constant 0 : index
    %c0_2 = arith.constant 0 : index
    %1 = vector.load %arg3[%c0_1, %c0_2] : memref<32x64xf32, #tpu.memory_space<vmem>>, vector<32x64xf32>
    %cst = arith.constant dense<0.000000e+00> : vector<8x64xf32>
    %2 = tpu.matmul %0, %1, %cst {dimension_numbers = #tpu.dot_dimension_numbers<[1], [0], [0], [1], [0, 0, 1, 1], [], []>} : vector<8x32xf32>, vector<32x64xf32>, vector<8x64xf32> -> vector<8x64xf32>
    %c0_3 = arith.constant 0 : index
    %c0_4 = arith.constant 0 : index
    %3 = vector.load %arg4[%c0_3, %c0_4] : memref<1x64xf32, #tpu.memory_space<vmem>>, vector<1x64xf32>
    %4 = vector.broadcast %3 : vector<1x64xf32> to vector<8x64xf32>
    %5 = arith.addf %2, %4 : vector<8x64xf32>
    %cst_5 = arith.constant 0.000000e+00 : f32
    %6 = vector.broadcast %cst_5 : f32 to vector<8x64xf32>
    %7 = arith.maximumf %5, %6 : vector<8x64xf32>
    %c0_6 = arith.constant 0 : index
    %c0_7 = arith.constant 0 : index
    %8 = vector.load %arg5[%c0_6, %c0_7] : memref<8x64xf32, #tpu.memory_space<vmem>>, vector<8x64xf32>
    tpu.vector_store %arg5[%c0_6, %c0_7], %7 {strides = array<i32>} : memref<8x64xf32, #tpu.memory_space<vmem>>, vector<8x64xf32>,
    return
  }
  func.func @transform_0(%arg0: i32, %arg1: i32) -> (i32, i32) {
    %c0_i32 = arith.constant 0 : i32
    %c0_i32_0 = arith.constant 0 : i32
    return %arg0, %c0_i32 : i32, i32
  }
  func.func @transform_1(%arg0: i32, %arg1: i32) -> (i32, i32) {
    %c0_i32 = arith.constant 0 : i32
    %c0_i32_0 = arith.constant 0 : i32
    return %c0_i32, %arg1 : i32, i32
  }
  func.func @transform_2(%arg0: i32, %arg1: i32) -> (i32, i32) {
    %c0_i32 = arith.constant 0 : i32
    %c0_i32_0 = arith.constant 0 : i32
    return %c0_i32, %arg1 : i32, i32
  }
  func.func @transform_3(%arg0: i32, %arg1: i32) -> (i32, i32) {
    %c0_i32 = arith.constant 0 : i32
    return %arg0, %arg1 : i32, i32
  }
}

</mosaic_0001>

<bundles_post_ra>
// kernel: tpu_custom_call.1
= control target key start
LH: loop header
LB: loop body
LE: loop exit
PB: predicated region body
PF: predicated region fallthrough
CT: control target
= control target key end

     0   :  { %8 = vsyncpa [#allocation3], 0  ;;  %s276_s0 = inlined_call_operand.hbm [shape: f32[8,32], index: 0, kind: input, shape index: {}]   ;;  %s277_s1 = inlined_call_operand.hbm [shape: f32[32,64], index: 1, kind: input, shape index: {}]   ;;  %s278_s2 = inlined_call_operand.vmem [shape: f32[1,64], index: 2, kind: input, shape index: {}]   ;;  %s279_s3 = inlined_call_operand.hbm [shape: f32[8,64], index: 3, kind: output, shape index: {}]  }
   0x1   :  { %9 = vsyncpa [#allocation6], 0 }
   0x2   :  { %10 = vsyncpa [#allocation4], 0  ;;  %s237_s12 = smov [#allocation2]   ;;  %s238_s14 = smov [#allocation5]  }
   0x3   :  { %s17_s13 = sshll.u32 %s237_s12, 4  ;;  %s26_s15 = sshll.u32 %s238_s14, 4  ;;  %s18_s13 = int_to_ptr.vmem [resolvable:$true] %s17_s13  ;;  %s27_s15 = int_to_ptr.vmem [resolvable:$true] %s26_s15 }
   0x4   :  { %s179_s16 = scalar_lea.vmem %s18_s13, 128  ;;  %p184_p1 = scmp.lt.s32.totalorder %s18_s13, %s18_s13 }
   0x5   :  { %p180_p0 = scmp.ne.s32.totalorder %s18_s13, %s179_s16  ;;  %p185_p2 = scmp.lt.s32.totalorder %s179_s16, %s179_s16 }
   0x7   :  { %p186_p3 = por %p185_p2, %p184_p1 }
   0x9   :  { %p187_p4 = pnand %p186_p3, %p180_p0 }
   0xb   :  { %190 = shalt.err (!%p187_p4)
}
   0xc   :  { %20 = dma.hbm_to_vmem [thread:$0]  %s276_s0, 128, %s18_s13, [#allocation3]  }
   0xd   :  { %s199_s19 = scalar_lea.vmem %s27_s15, 512  ;;  %p204_p6 = scmp.lt.s32.totalorder %s27_s15, %s27_s15 }
   0xe   :  { %p200_p5 = scmp.ne.s32.totalorder %s27_s15, %s199_s19  ;;  %p205_p7 = scmp.lt.s32.totalorder %s199_s19, %s199_s19 }
  0x10   :  { %p206_p8 = por %p205_p7, %p204_p6 }
  0x12   :  { %p207_p9 = pnand %p206_p8, %p200_p5 }
  0x14   :  { %210 = shalt.err (!%p207_p9)
}
  0x15   :  { %s239_s20 = smov 128   ;;  %s240_s21 = smov 8  }
  0x16   :  { %32 = dma.hbm_to_vmem [thread:$0]  %s277_s1, 512, %s27_s15, [#allocation6], %s239_s20, %s239_s20, %s240_s21  }
  0x17   :  { %231 = dma.done.wait [#allocation3], 128  }
  0x18   :  { %232 = vsyncadd [#allocation3], 4294967168 }
  0x19   :  { %233 = dma.done.wait [#allocation6], 512  }
  0x1a   :  { %234 = vsyncadd [#allocation6], 4294966784  ;;  %v241_v0 = vmov 0.0   ;;  %vm242_vm0 = vmmov 0   ;;  %v45_v1 = vld [vmem:[#allocation5 + $0x18] sm:$0xff]  ;;  %v44_v2 = vld [vmem:[#allocation5 + $0x10] sm:$0xff] }
  0x1b   :  { %153 = vmatprep.subr.mxu0 %v241_v0  ;;  %161 = vmatprep.mubr.msk.f32.mxu0 %vm242_vm0, %v241_v0  ;;  %v43_v3 = vld [vmem:[#allocation5 + $0x8] sm:$0xff]  ;;  %v42_v4 = vld [vmem:[#allocation5] sm:$0xff]  ;;  %v41_v5 = vld [vmem:[#allocation2] sm:$0xff]  ;;  %vm53_vm1 = vcmask 261120   ;;  %s243_s24 = smov [#allocation7]   ;;  %vm128_vm2 = vcmask 523264  }
  0x1c   :  { %154 = vmatpush3.msra.mxu0 %v45_v1  ;;  %v146_v6 = vld [vmem:[%s278_s2] ss:$0 sm:$0xff]  ;;  %s136_s25 = sshll.u32 %s243_s24, 4  ;;  %s137_s25 = int_to_ptr.vmem [resolvable:$true] %s136_s25 }
  0x1d   :  { %155 = vmatprep.subr.mxu0 %v241_v0  ;;  %s211_s26 = scalar_lea.vmem %s137_s25, 128  ;;  %p216_p11 = scmp.lt.s32.totalorder %s137_s25, %s137_s25 }
  0x1e   :  { %156 = vmatpush3.msra.mxu0 %v44_v2  ;;  %p212_p10 = scmp.ne.s32.totalorder %s137_s25, %s211_s26  ;;  %p217_p12 = scmp.lt.s32.totalorder %s211_s26, %s211_s26 }
  0x1f   :  { %157 = vmatprep.subr.mxu0 %v241_v0 }
  0x20   :  { %158 = vmatpush3.msra.mxu0 %v43_v3  ;;  %p218_p13 = por %p217_p12, %p216_p11 }
  0x21   :  { %159 = vmatprep.subr.mxu0 %v241_v0 }
  0x22   :  { %160 = vmatpush3.msra.mxu0 %v42_v4  ;;  %p219_p0 = pnand %p218_p13, %p212_p10 }
  0x23   :  { %162 = vmatmul.mubr.msk.f32.vlgmr.msra.gmra.mxu0 %vm53_vm1, %v41_v5 }
  0xe3   :  { %v123_v7 = vpop.f32.mrf.mxu0 }
  0xe4   :  { %v124_v8 = vadd.f32 %v146_v6, %v123_v7 }
  0xe5   :  { %v163_v9 = vpop.f32.mrf.mxu0 }
  0xe6   :  { %v127_v10 = vmax.f32 %v124_v8, 0.0 }
  0xe8   :  { %129 = vst.msk [vmem:[#allocation7] sm:$0xff] %vm128_vm2, %v127_v10 }
  0xe9   :  { %222 = shalt.err (!%p219_p0)
}
  0xea   :  { %139 = dma.vmem_to_hbm [thread:$0]  %s137_s25, 128, %s279_s3, [#allocation4]  }
  0xeb   :  { %235 = dma.done.wait [#allocation4], 128  }
  0xec   :  { %236 = vsyncadd [#allocation4], 4294967168 }
  0xed   :  { %143 = vsyncpa [#allocation3], 1 }
  0xee   :  { %144 = vsyncpa [#allocation6], 1 }
  0xef   :  { %145 = vsyncpa [#allocation4], 1 }

</bundles_post_ra>
